<compile_context>
chip_gen: v6e
topology: v6e:2x2x1
jax: 0.10.0
libtpu: 0.0.40
codegen_flags: <defaults>
</compile_context>

<pallas_src>
import functools

import jax
import jax.numpy as jnp
from jax.experimental import pallas as pl
from jax.experimental.pallas import tpu as pltpu


def _round_up(x, m):
    return ((x + m - 1) // m) * m


def actor_continuous_kernel(
    x_ref,      # [OBS, TB]              f32   states^T (streamed over batch tiles)
    w1t_ref,    # [H, OBS]               bf16  resident
    w2t_ref,    # [H, H]                 bf16  resident
    w3t_ref,    # [A, H]                 bf16  resident
    bias_ref,   # [2H + 2*pad(A), 1]     f32   resident: [b1 | b2 | b3(pad) | log_std(pad)]
    eps_ref,    # [A, TB]                f32   standard-normal noise (streamed)
    out_ref,    # [2A, TB]               f32   rows [:A] = mu, rows [A:] = sampled actions
):
    cdt = w1t_ref.dtype                      # bf16 matmul operands, f32 accumulation
    h = w1t_ref.shape[0]
    a = w3t_ref.shape[0]
    pa = (bias_ref.shape[0] - 2 * h) // 2    # 8-aligned per-segment padding for b3 / log_std

    b1 = bias_ref[0:h, :]                    # [H, 1]
    b2 = bias_ref[h:2 * h, :]                # [H, 1]
    b3 = bias_ref[2 * h:2 * h + a, :]        # [A, 1]
    log_std = bias_ref[2 * h + pa:2 * h + pa + a, :]   # [A, 1]

    # actor_net: Linear -> tanh -> Linear -> tanh -> Linear, batch on the lane axis.
    x = x_ref[...]                                                     # [OBS, TB] f32
    h1 = jnp.tanh(
        jnp.dot(w1t_ref[...], x.astype(cdt), preferred_element_type=jnp.float32) + b1
    )                                                                  # [H, TB]
    h2 = jnp.tanh(
        jnp.dot(w2t_ref[...], h1.astype(cdt), preferred_element_type=jnp.float32) + b2
    )                                                                  # [H, TB]
    mu = (
        jnp.dot(w3t_ref[...], h2.astype(cdt), preferred_element_type=jnp.float32) + b3
    )                                                                  # [A, TB]

    # std = exp(log_std) as an [A, 1] column; implicit lane broadcast (no [A, TB] std store).
    std_col = jnp.exp(log_std)

    # pi.sample() == mu + std * eps
    actions = mu + std_col * eps_ref[...]                              # [A, TB]

    # One full-tile, unmasked, lane-dense writeback.
    out_ref[...] = jnp.concatenate([mu, actions], axis=0)              # [2A, TB]


@functools.partial(jax.jit, static_argnames=("block_b",))
def actor_continuous_forward(states, params, key, *, block_b=256):
    """Pallas forward. Returns (pi, actions) with pi = (mu, std)."""
    b, obs_dim = states.shape
    hidden = params["w1t"].shape[0]
    a_dim = params["w3t"].shape[0]

    # Lane-dense tiling: batch lives on the lane axis, tiles are multiples of 128 lanes.
    bp = _round_up(b, 128)
    tb = min(_round_up(block_b, 128), bp)
    bp = _round_up(bp, tb)
    grid = (bp // tb,)

    # Transposed, batch-padded inputs (tiny host-side transposes on [B, OBS] / [A, B]).
    states_t = jnp.pad(states.T.astype(jnp.float32), ((0, 0), (0, bp - b)))   # [OBS, bp]
    eps = jax.random.normal(key, (a_dim, b), jnp.float32)                     # [A, b]
    eps_t = jnp.pad(eps, ((0, 0), (0, bp - b)))                               # [A, bp]

    pack_rows = params["bias_pack"].shape[0]

    grid_spec = pltpu.PrefetchScalarGridSpec(
        num_scalar_prefetch=0,
        grid=grid,
        in_specs=[
            pl.BlockSpec((obs_dim, tb), lambda i: (0, i)),       # states^T (streamed)
            pl.BlockSpec((hidden, obs_dim), lambda i: (0, 0)),   # w1^T (resident)
            pl.BlockSpec((hidden, hidden), lambda i: (0, 0)),    # w2^T (resident)
            pl.BlockSpec((a_dim, hidden), lambda i: (0, 0)),     # w3^T (resident)
            pl.BlockSpec((pack_rows, 1), lambda i: (0, 0)),      # packed biases + log_std
            pl.BlockSpec((a_dim, tb), lambda i: (0, i)),         # eps (streamed)
        ],
        out_specs=pl.BlockSpec((2 * a_dim, tb), lambda i: (0, i)),
    )

    fused = pl.pallas_call(
        actor_continuous_kernel,
        out_shape=jax.ShapeDtypeStruct((2 * a_dim, bp), jnp.float32),
        grid_spec=grid_spec,
        compiler_params=pltpu.CompilerParams(dimension_semantics=("parallel",)),
    )(states_t, params["w1t"], params["w2t"], params["w3t"], params["bias_pack"], eps_t)

    mu = fused[:a_dim, :b].T                  # [B, A]
    actions = fused[a_dim:, :b].T             # [B, A]
    std = jnp.broadcast_to(jnp.exp(params["log_std"]), mu.shape)
    pi = (mu, std)
    return pi, actions


def make_params(key, obs_dim, hidden, act_dim):
    """f32 parameters mirroring the canonical PPO MLP + log_std."""
    ks = jax.random.split(key, 6)
    scale = 0.1
    return {
        "w1": scale * jax.random.normal(ks[0], (obs_dim, hidden), jnp.float32),
        "b1": scale * jax.random.normal(ks[1], (1, hidden), jnp.float32),
        "w2": scale * jax.random.normal(ks[2], (hidden, hidden), jnp.float32),
        "b2": scale * jax.random.normal(ks[3], (1, hidden), jnp.float32),
        "w3": scale * jax.random.normal(ks[4], (hidden, act_dim), jnp.float32),
        "b3": scale * jax.random.normal(ks[5], (1, act_dim), jnp.float32),
        # log_std = -0.5 * ones(act_dim)   (as in ActorContinous.__init__)
        "log_std": jnp.full((1, act_dim), -0.5, dtype=jnp.float32),
    }


def prepare_params(p):
    """Kernel-layout params: transposed bf16 weights + one packed f32 bias/log_std column."""
    hidden = p["w1"].shape[1]
    a_dim = p["w3"].shape[1]
    pa = _round_up(a_dim, 8)   # 8-aligned segments so in-kernel slices land on sublane bounds

    b3_pad = jnp.zeros((pa,), jnp.float32).at[:a_dim].set(p["b3"].reshape(-1))
    ls_pad = jnp.zeros((pa,), jnp.float32).at[:a_dim].set(p["log_std"].reshape(-1))
    bias_pack = jnp.concatenate(
        [p["b1"].reshape(-1), p["b2"].reshape(-1), b3_pad, ls_pad]
    ).reshape(-1, 1)                              # [2H + 2*pa, 1]

    return {
        "w1t": p["w1"].T.astype(jnp.bfloat16),    # [H, OBS]
        "w2t": p["w2"].T.astype(jnp.bfloat16),    # [H, H]
        "w3t": p["w3"].T.astype(jnp.bfloat16),    # [A, H]
        "bias_pack": bias_pack,
        "log_std": p["log_std"],                  # [1, A] (wrapper-side std)
    }


def reference_forward(states, params_f32, key):
    """Pure-JAX reference with the same bf16-operand / f32-accumulate matmul contract."""
    def mm(x, w):
        return jnp.dot(x.astype(jnp.bfloat16), w.astype(jnp.bfloat16),
                       preferred_element_type=jnp.float32)

    h1 = jnp.tanh(mm(states, params_f32["w1"]) + params_f32["b1"])
    h2 = jnp.tanh(mm(h1, params_f32["w2"]) + params_f32["b2"])
    mu = mm(h2, params_f32["w3"]) + params_f32["b3"]
    std = jnp.broadcast_to(jnp.exp(params_f32["log_std"]), mu.shape)
    a_dim = params_f32["log_std"].shape[-1]
    eps = jax.random.normal(key, (a_dim, states.shape[0]), jnp.float32).T   # same draw as kernel
    actions = mu + std * eps
    return mu, std, actions


if __name__ == "__main__":
    B, OBS, H, A = 512, 16, 32, 4   # small PPO-style head; tb=256 -> 2 lane-dense batch tiles

    key = jax.random.PRNGKey(0)
    k_params, k_states, k_noise = jax.random.split(key, 3)

    params_f32 = make_params(k_params, OBS, H, A)
    params = prepare_params(params_f32)
    states = jax.random.normal(k_states, (B, OBS), jnp.float32)

    (mu, std), actions = actor_continuous_forward(states, params, k_noise, block_b=256)
    jax.block_until_ready((mu, std, actions))

    mu_ref, std_ref, actions_ref = reference_forward(states, params_f32, k_noise)

    assert mu.shape == (B, A) and std.shape == (B, A) and actions.shape == (B, A)
    assert jnp.allclose(mu, mu_ref, atol=2e-3, rtol=2e-3), float(jnp.max(jnp.abs(mu - mu_ref)))
    assert jnp.allclose(std, std_ref, atol=1e-6, rtol=1e-6)
    assert jnp.allclose(actions, actions_ref, atol=2e-3, rtol=2e-3), \
        float(jnp.max(jnp.abs(actions - actions_ref)))
    assert bool(jnp.all(jnp.isfinite(actions)))

    # Sampled noise sanity: z = (actions - mu) / std should be ~N(0,1).
    z = (actions - mu) / std
    assert abs(float(jnp.mean(z))) < 0.15, float(jnp.mean(z))
    assert 0.8 < float(jnp.std(z)) < 1.2, float(jnp.std(z))

    print("KERNEL_OK")
</pallas_src>

<mosaic_0001>
module attributes {stable_mosaic.version = 11 : i64} {
  func.func @actor_continuous_kernel(%arg0: i32, %arg1: memref<16x256xf32, #tpu.memory_space<vmem>>, %arg2: memref<32x16xbf16, #tpu.memory_space<vmem>>, %arg3: memref<32x32xbf16, #tpu.memory_space<vmem>>, %arg4: memref<4x32xbf16, #tpu.memory_space<vmem>>, %arg5: memref<80x1xf32, #tpu.memory_space<vmem>>, %arg6: memref<4x256xf32, #tpu.memory_space<vmem>>, %arg7: memref<8x256xf32, #tpu.memory_space<vmem>>) attributes {dimension_semantics = [#tpu.dimension_semantics<parallel>], iteration_bounds = array<i64: 2>, scalar_prefetch = 0 : i64, scratch_operands = 0 : i64, tpu.core_type = #tpu.core_type<tc>, window_params = [{transform_indices = @transform_0, window_bounds = array<i64: 16, 256>}, {pipeline_mode = #tpu.pipeline_mode<synchronous>, transform_indices = @transform_1, window_bounds = array<i64: 32, 16>}, {pipeline_mode = #tpu.pipeline_mode<synchronous>, transform_indices = @transform_2, window_bounds = array<i64: 32, 32>}, {pipeline_mode = #tpu.pipeline_mode<synchronous>, transform_indices = @transform_3, window_bounds = array<i64: 4, 32>}, {pipeline_mode = #tpu.pipeline_mode<synchronous>, transform_indices = @transform_4, window_bounds = array<i64: 80, 1>}, {transform_indices = @transform_5, window_bounds = array<i64: 4, 256>}, {transform_indices = @transform_6, window_bounds = array<i64: 8, 256>}]} {
    %c0 = arith.constant 0 : index
    %c0_0 = arith.constant 0 : index
    %0 = vector.load %arg5[%c0, %c0_0] : memref<80x1xf32, #tpu.memory_space<vmem>>, vector<32x1xf32>
    %c32 = arith.constant 32 : index
    %c0_1 = arith.constant 0 : index
    %1 = vector.load %arg5[%c32, %c0_1] : memref<80x1xf32, #tpu.memory_space<vmem>>, vector<32x1xf32>
    %c64 = arith.constant 64 : index
    %c0_2 = arith.constant 0 : index
    %2 = vector.load %arg5[%c64, %c0_2] : memref<80x1xf32, #tpu.memory_space<vmem>>, vector<4x1xf32>
    %c72 = arith.constant 72 : index
    %c0_3 = arith.constant 0 : index
    %3 = vector.load %arg5[%c72, %c0_3] : memref<80x1xf32, #tpu.memory_space<vmem>>, vector<4x1xf32>
    %c0_4 = arith.constant 0 : index
    %c0_5 = arith.constant 0 : index
    %4 = vector.load %arg1[%c0_4, %c0_5] : memref<16x256xf32, #tpu.memory_space<vmem>>, vector<16x256xf32>
    %c0_6 = arith.constant 0 : index
    %c0_7 = arith.constant 0 : index
    %5 = vector.load %arg2[%c0_6, %c0_7] : memref<32x16xbf16, #tpu.memory_space<vmem>>, vector<32x16xbf16>
    %6 = arith.truncf %4 : vector<16x256xf32> to vector<16x256xbf16>
    %cst = arith.constant dense<0.000000e+00> : vector<32x256xf32>
    %7 = tpu.matmul %5, %6, %cst {dimension_numbers = #tpu.dot_dimension_numbers<[1], [0], [0], [1], [0, 0, 1, 1], [], []>} : vector<32x16xbf16>, vector<16x256xbf16>, vector<32x256xf32> -> vector<32x256xf32>
    %8 = vector.broadcast %0 : vector<32x1xf32> to vector<32x256xf32>
    %9 = arith.addf %7, %8 : vector<32x256xf32>
    %10 = math.tanh %9 : vector<32x256xf32>
    %c0_8 = arith.constant 0 : index
    %c0_9 = arith.constant 0 : index
    %11 = vector.load %arg3[%c0_8, %c0_9] : memref<32x32xbf16, #tpu.memory_space<vmem>>, vector<32x32xbf16>
    %12 = arith.truncf %10 : vector<32x256xf32> to vector<32x256xbf16>
    %cst_10 = arith.constant dense<0.000000e+00> : vector<32x256xf32>
    %13 = tpu.matmul %11, %12, %cst_10 {dimension_numbers = #tpu.dot_dimension_numbers<[1], [0], [0], [1], [0, 0, 1, 1], [], []>} : vector<32x32xbf16>, vector<32x256xbf16>, vector<32x256xf32> -> vector<32x256xf32>
    %14 = vector.broadcast %1 : vector<32x1xf32> to vector<32x256xf32>
    %15 = arith.addf %13, %14 : vector<32x256xf32>
    %16 = math.tanh %15 : vector<32x256xf32>
    %c0_11 = arith.constant 0 : index
    %c0_12 = arith.constant 0 : index
    %17 = vector.load %arg4[%c0_11, %c0_12] : memref<4x32xbf16, #tpu.memory_space<vmem>>, vector<4x32xbf16>
    %18 = arith.truncf %16 : vector<32x256xf32> to vector<32x256xbf16>
    %cst_13 = arith.constant dense<0.000000e+00> : vector<4x256xf32>
    %19 = tpu.matmul %17, %18, %cst_13 {dimension_numbers = #tpu.dot_dimension_numbers<[1], [0], [0], [1], [0, 0, 1, 1], [], []>} : vector<4x32xbf16>, vector<32x256xbf16>, vector<4x256xf32> -> vector<4x256xf32>
    %20 = vector.broadcast %2 : vector<4x1xf32> to vector<4x256xf32>
    %21 = arith.addf %19, %20 : vector<4x256xf32>
    %22 = math.exp %3 : vector<4x1xf32>
    %c0_14 = arith.constant 0 : index
    %c0_15 = arith.constant 0 : index
    %23 = vector.load %arg6[%c0_14, %c0_15] : memref<4x256xf32, #tpu.memory_space<vmem>>, vector<4x256xf32>
    %24 = vector.broadcast %22 : vector<4x1xf32> to vector<4x256xf32>
    %25 = arith.mulf %24, %23 : vector<4x256xf32>
    %26 = arith.addf %21, %25 : vector<4x256xf32>
    %27 = tpu.concatenate %21, %26 in 0 : vector<4x256xf32>, vector<4x256xf32> -> vector<8x256xf32>
    %c0_16 = arith.constant 0 : index
    %c0_17 = arith.constant 0 : index
    %28 = vector.load %arg7[%c0_16, %c0_17] : memref<8x256xf32, #tpu.memory_space<vmem>>, vector<8x256xf32>
    tpu.vector_store %arg7[%c0_16, %c0_17], %27 {strides = array<i32>} : memref<8x256xf32, #tpu.memory_space<vmem>>, vector<8x256xf32>,
    return
  }
  func.func @transform_0(%arg0: i32) -> (i32, i32) {
    %c0_i32 = arith.constant 0 : i32
    %c0_i32_0 = arith.constant 0 : i32
    return %c0_i32, %arg0 : i32, i32
  }
  func.func @transform_1(%arg0: i32) -> (i32, i32) {
    %c0_i32 = arith.constant 0 : i32
    %c0_i32_0 = arith.constant 0 : i32
    %c0_i32_1 = arith.constant 0 : i32
    return %c0_i32, %c0_i32_0 : i32, i32
  }
  func.func @transform_2(%arg0: i32) -> (i32, i32) {
    %c0_i32 = arith.constant 0 : i32
    %c0_i32_0 = arith.constant 0 : i32
    %c0_i32_1 = arith.constant 0 : i32
    return %c0_i32, %c0_i32_0 : i32, i32
  }
  func.func @transform_3(%arg0: i32) -> (i32, i32) {
    %c0_i32 = arith.constant 0 : i32
    %c0_i32_0 = arith.constant 0 : i32
    %c0_i32_1 = arith.constant 0 : i32
    return %c0_i32, %c0_i32_0 : i32, i32
  }
  func.func @transform_4(%arg0: i32) -> (i32, i32) {
    %c0_i32 = arith.constant 0 : i32
    %c0_i32_0 = arith.constant 0 : i32
    %c0_i32_1 = arith.constant 0 : i32
    return %c0_i32, %c0_i32_0 : i32, i32
  }
  func.func @transform_5(%arg0: i32) -> (i32, i32) {
    %c0_i32 = arith.constant 0 : i32
    %c0_i32_0 = arith.constant 0 : i32
    return %c0_i32, %arg0 : i32, i32
  }
  func.func @transform_6(%arg0: i32) -> (i32, i32) {
    %c0_i32 = arith.constant 0 : i32
    %c0_i32_0 = arith.constant 0 : i32
    return %c0_i32, %arg0 : i32, i32
  }
}

</mosaic_0001>

<bundles_post_ra>
// kernel: actor_continuous_forward.1
= control target key start
LH: loop header
LB: loop body
LE: loop exit
PB: predicated region body
PF: predicated region fallthrough
CT: control target
= control target key end

     0   :  { %s832_s21 = smov 0   ;;  %s834_s22 = smov 0   ;;  %s944_s0 = inlined_call_operand.vmem [shape: f32[16,512], index: 0, kind: input, shape index: {}]   ;;  %s945_s1 = inlined_call_operand.vmem [shape: bf16[32,16], index: 1, kind: input, shape index: {}]   ;;  %s946_s2 = inlined_call_operand.vmem [shape: bf16[32,32], index: 2, kind: input, shape index: {}]   ;;  %s947_s3 = inlined_call_operand.vmem [shape: bf16[4,32], index: 3, kind: input, shape index: {}]   ;;  %s948_s4 = inlined_call_operand.vmem [shape: f32[80,1], index: 4, kind: input, shape index: {}]   ;;  %s949_s5 = inlined_call_operand.vmem [shape: f32[4,512], index: 5, kind: input, shape index: {}]   ;;  %s950_s6 = inlined_call_operand.vmem [shape: f32[8,512], index: 6, kind: output, shape index: {}]  }
   0x1   :  { %s836_s23 = smov 0  }
   0x2 LB: > { %s681_s24 = sadd.s32 4294967295, %s794_s23   ;;  %s849_s25 = sadd.s32 1, %s794_s23   ;;  %s794_s23 = sphi %s836_s23, %s953_s23   ;;  %s790_s22 = sphi %s834_s22, %s952_s22   ;;  %s786_s21 = sphi %s832_s21, %s951_s21  }
   0x3   : > { %s20_s26 = ssub.s32 %s794_s23, %s849_s25  ;;  %s23_s27 = sadd.s32 1, %s790_s22 }
   0x4   : > { %p21_p0 = scmp.eq.s32.totalorder %s20_s26, 0  ;;  %p30_p1 = scmp.ne.s32.totalorder %s790_s22, %s786_s21 }
   0x5   : > { %p31_p2 = scmp.eq.s32.totalorder %s794_s23, 0  ;;  %p684_p4 = scmp.ge.s32.totalorder %s794_s23, 2 }
   0x6   : > { %s858_s28 = scalar_select %p21_p0, %s790_s22, %s23_s27  }
   0x7   : > { %p32_p3 = por %p31_p2, %p30_p1  ;;  %204 = sbr.rel (%p684_p4) target bundleno = 18 (0x12), region = 32 }
   0xc   : > { %207 = sbr.rel (!%p32_p3) target bundleno = 18 (0x12), region = 36  ;;  %s209_s29 = sand.u32 (%p32_p3), 1, %s790_s22  }
   0xd   : > { %s705_s30 = sshll.u32 (%p32_p3), %s794_s23, 4  ;;  %s685_s7 = sshll.u32 (%p32_p3), %s209_s29, 5 }
   0xe   : > { %s214_s10 = scalar_lea.vmem (%p32_p3), %s944_s0, %s705_s30  ;;  %s211_s11 = scalar_lea.vmem (%p32_p3), [#allocation2], %s685_s7 }
   0xf   : > { %v227_v0 = vld [vmem:[%s214_s10] sm:$0xff] (%p32_p3)  ;;  %v229_v1 = vld [vmem:[%s214_s10 + $0x8] sm:$0xff] (%p32_p3) }
  0x10   : > { %v231_v2 = vld [vmem:[%s214_s10 + $0x20] sm:$0xff] (%p32_p3)  ;;  %228 = vst [vmem:[%s211_s11] sm:$0xff] (%p32_p3), %v227_v0  ;;  %230 = vst [vmem:[%s211_s11 + $0x8] sm:$0xff] (%p32_p3), %v229_v1  ;;  %v233_v3 = vld [vmem:[%s214_s10 + $0x28] sm:$0xff] (%p32_p3) }
  0x11   : > { %232 = vst [vmem:[%s211_s11 + $0x10] sm:$0xff] %v231_v2  ;;  %234 = vst [vmem:[%s211_s11 + $0x18] sm:$0xff] %v233_v3 }
  0x12 PF: > { %p688_p5 = scmp.ge.s32.totalorder %s794_s23, 1  ;;  %p248_p6 = scmp.lt.s32.totalorder %s794_s23, 3 }
  0x14   : > { %p249_p7 = pnand %p688_p5, %p248_p6 }
  0x15   : > { %s255_s12 = sand.u32 (!%p249_p7), 1, %s786_s21   ;;  %s690_s7 = sshll.u32 (!%p249_p7), %s681_s24, 1 }
  0x16   : > { %252 = sbr.rel (%p249_p7) target bundleno = 704 (0x2c0), region = 63  ;;  %s689_s13 = sshll.u32 (!%p249_p7), %s255_s12, 5 }
  0x17   : > { %s257_s16 = scalar_lea.vmem (!%p249_p7), [#allocation2], %s689_s13  ;;  %p291_p8 = scmp.lt.s32.totalorder (!%p249_p7), %s690_s7, 3 }
  0x1b   : > { %v796_v4 = vmov 0   ;;  %v305_v5 = vld [vmem:[%s948_s4 + $0x10] sm:$0xff]  ;;  %v314_v6 = vld [vmem:[%s257_s16 + $0x8] sm:$0xff]  ;;  %v316_v7 = vld [vmem:[%s257_s16 + $0x18] sm:$0xff]  ;;  %vm353_vm0 = vcmask 130048   ;;  %vm459_vm1 = vcmask 261120  }
  0x1c   : > { %392 = vmatprep.mubr.bf16.mxu0 %v796_v4  ;;  %731 = vset.pattern.permute.xlu0 %v796_v4  ;;  %v313_v8 = vld [vmem:[%s257_s16] sm:$0xff]  ;;  %v322_v9 = vpack.c.bf16 %v316_v7, %v314_v6  ;;  %v315_v10 = vld [vmem:[%s257_s16 + $0x10] sm:$0xff]  ;;  %v306_v11 = vld [vmem:[%s948_s4 + $0x18] sm:$0xff]  ;;  %s955_s7 = smov (!%p291_p8, %s690_s7), 3  ;;  %vm602_vm2 = vcmask 1043456  }
  0x1d   : > { %732 = vset.pattern.permute.xlu1 %v796_v4  ;;  %498 = vmatprep.mubr.bf16.mxu1 %v796_v4  ;;  %v303_v12 = vld [vmem:[%s948_s4] sm:$0xff]  ;;  %v321_v13 = vpack.c.bf16 %v315_v10, %v313_v8  ;;  %v304_v15 = vld [vmem:[%s948_s4 + $0x8] sm:$0xff]  ;;  %v309_v18 = vld [vmem:[%s948_s4 + $0x30] sm:$0xff]  ;;  %s691_s8 = sshll.u32 %s955_s7, 2  ;;  %s693_s12 = sshll.u32 %s955_s7, 3 }
  0x1e   : > { %335 = vperm.xlu0 %731, %v305_v5   ;;  %325 = vperm.xlu1 %732, %v303_v12   ;;  %v733_v14 = vld [vmem:[%s945_s1] sm:$0xff]   ;;  %v312_v16 = vld [vmem:[%s948_s4 + $0x48] sm:$0xf]  ;;  %v310_v19 = vld [vmem:[%s948_s4 + $0x38] sm:$0xff]  ;;  %s294_s11 = scalar_lea.vmem %s949_s5, %s691_s8  ;;  %s300_s13 = scalar_lea.vmem %s950_s6, %s693_s12 }
  0x1f   : > { %374 = vmatprep.subr.bf16.mxu0 %v322_v9  ;;  %v581_v17 = vmul.f32 1.442695, %v312_v16  ;;  %v307_v20 = vld [vmem:[%s948_s4 + $0x20] sm:$0xff]  ;;  %v734_v21 = vld [vmem:[%s945_s1 + $0x8] sm:$0xff]  }
  0x20   : > { %375 = vmatpush1.bf16.msra.mxu0 %v321_v13  ;;  %v308_v22 = vld [vmem:[%s948_s4 + $0x28] sm:$0xff]  ;;  %v311_v23 = vld [vmem:[%s948_s4 + $0x40] sm:$0xf] }
  0x21   : > { %738 = vpow2.f32 %v581_v17  ;;  %v736_v57 = vld [vmem:[%s946_s2] sm:$0xff]   ;;  %v737_v58 = vld [vmem:[%s946_s2 + $0x8] sm:$0xff]  }
  0x22   : > { %340 = vperm.xlu0 %731, %v306_v11   ;;  %330 = vperm.xlu1 %732, %v304_v15  }
  0x23   : > { %696 = vmatmul.mubr.msk.bf16.vlgmr.msra.gmra.mxu0 %vm353_vm0, %v733_v14 }
  0x24   : > { %402 = vmatprep.mubr.bf16.mxu0 %v796_v4 }
  0x26   : > { %441 = vperm.xlu0 %731, %v309_v18   ;;  %446 = vperm.xlu1 %732, %v310_v19  }
  0x2a   : > { %431 = vperm.xlu0 %731, %v307_v20   ;;  %436 = vperm.xlu1 %732, %v308_v22  }
  0x2b   : > { %697 = vmatmul.mubr.msk.bf16.gmra.mxu0 %vm353_vm0, %v734_v21 }
  0x2c   : > { %572 = vmatprep.mubr.bf16.mxu0 %v796_v4 }
  0x2e   : > { %534 = vperm.xlu0 %731, %v311_v23   ;;  %v739_v24 = vpop.eup %738 }
  0x2f   : > { %586 = vperm.xlu1 %732, %v739_v24  }
  0x99   : > { %v326_v27 = vpop.permute.xlu1 %325  ;;  %v336_v29 = vpop.permute.xlu0 %335 }
  0x9d   : > { %v331_v32 = vpop.permute.xlu1 %330  ;;  %v341_v36 = vpop.permute.xlu0 %340 }
  0xa1   : > { %v447_v61 = vpop.permute.xlu1 %446  ;;  %v442_v0 = vpop.permute.xlu0 %441 }
  0xa5   : > { %v437_v2 = vpop.permute.xlu1 %436 }
  0xe3   : > { %v394_v25 = vpop.f32.mrf.mxu0 }
  0xe4   : > { %v395_v44 = vadd.f32 %v394_v25, %v326_v27 }
  0xe5   : > { %v396_v26 = vpop.f32.mrf.mxu0 }
  0xe6   : > { %v397_v41 = vadd.f32 %v396_v26, %v326_v27  ;;  %v527_v27 = vld [vmem:[%s947_s3] sm:$0x3] }
  0xe7   : > { %v398_v28 = vpop.f32.mrf.mxu0 }
  0xe8   : > { %v399_v43 = vadd.f32 %v398_v28, %v331_v32  ;;  %v583_v28 = vld [vmem:[%s294_s11] sm:$0xff] }
  0xe9   : > { %v400_v30 = vpop.f32.mrf.mxu0 }
  0xea   : > { %v401_v33 = vadd.f32 %v400_v30, %v331_v32  ;;  %v590_v30 = vcombine.high %v583_v28, %v583_v28 }
  0xeb   : > { %v404_v31 = vpop.f32.mrf.mxu0 }
  0xec   : > { %740 = vtanh.f32 %v401_v33  ;;  %v405_v39 = vadd.f32 %v404_v31, %v336_v29 }
  0xed   : > { %v406_v34 = vpop.f32.mrf.mxu0 }
  0xee   : > { %v407_v35 = vadd.f32 %v406_v34, %v336_v29  ;;  %v587_v29 = vpop.permute.xlu1 %586 }
  0xef   : > { %v408_v37 = vpop.f32.mrf.mxu0  ;;  %v592_v33 = vmul.f32 %v587_v29, %v583_v28 }
  0xf0   : > { %v409_v38 = vadd.f32 %v408_v37, %v341_v36  ;;  %742 = vtanh.f32 %v407_v35 }
  0xf1   : > { %v410_v40 = vpop.f32.mrf.mxu0 }
  0xf2   : > { %v411_v42 = vadd.f32 %v410_v40, %v341_v36  ;;  %744 = vtanh.f32 %v409_v38  ;;  %v593_v36 = vmul.f32 %v590_v30, %v587_v29 }
  0xf4   : > { %746 = vtanh.f32 %v411_v42 }
  0xf5   : > { %748 = vtanh.f32 %v405_v39 }
  0xf6   : > { %750 = vtanh.f32 %v397_v41 }
  0xf7   : > { %752 = vtanh.f32 %v399_v43 }
  0xf8   : > { %754 = vtanh.f32 %v395_v44 }
  0xf9   : > { %v741_v45 = vpop.eup %740 }
  0xfd   : > { %v743_v46 = vpop.eup %742 }
  0xff   : > { %v745_v47 = vpop.eup %744 }
 0x101   : > { %v747_v48 = vpop.eup %746 }
 0x102   : > { %v749_v49 = vpop.eup %748  ;;  %v428_v50 = vpack.c.bf16 %v747_v48, %v743_v46 }
 0x103   : > { %v751_v51 = vpop.eup %750  ;;  %v427_v52 = vpack.c.bf16 %v745_v47, %v749_v49 }
 0x104   : > { %v753_v53 = vpop.eup %752  ;;  %478 = vmatprep.subr.bf16.mxu1 %v428_v50  ;;  %v426_v54 = vpack.c.bf16 %v741_v45, %v751_v51 }
 0x105   : > { %479 = vmatpush1.bf16.msra.mxu1 %v427_v52  ;;  %v755_v55 = vpop.eup %754 }
 0x106   : > { %480 = vmatprep.subr.bf16.mxu1 %v426_v54  ;;  %v425_v56 = vpack.c.bf16 %v753_v53, %v755_v55 }
 0x109   : > { %481 = vmatpush1.bf16.msra.mxu1 %v425_v56 }
 0x10c   : > { %700 = vmatmul.mubr.msk.bf16.vlgmr.msra.gmra.mxu1 %vm459_vm1, %v736_v57 }
 0x10d   : > { %508 = vmatprep.mubr.bf16.mxu1 %v796_v4  ;;  %v432_v4 = vpop.permute.xlu0 %431 }
 0x111   : > { %v535_v31 = vpop.permute.xlu0 %534 }
 0x114   : > { %701 = vmatmul.mubr.msk.bf16.gmra.mxu1 %vm459_vm1, %v737_v58 }
 0x1cc   : > { %v500_v59 = vpop.f32.mrf.mxu1 }
 0x1cd   : > { %v501_v14 = vadd.f32 %v500_v59, %v432_v4 }
 0x1ce   : > { %v502_v60 = vpop.f32.mrf.mxu1 }
 0x1cf   : > { %v503_v11 = vadd.f32 %v502_v60, %v432_v4 }
 0x1d0   : > { %v504_v62 = vpop.f32.mrf.mxu1 }
 0x1d1   : > { %v505_v13 = vadd.f32 %v504_v62, %v437_v2 }
 0x1d2   : > { %v506_v63 = vpop.f32.mrf.mxu1 }
 0x1d3   : > { %v507_v3 = vadd.f32 %v506_v63, %v437_v2 }
 0x1d4   : > { %v510_v1 = vpop.f32.mrf.mxu1 }
 0x1d5   : > { %756 = vtanh.f32 %v507_v3  ;;  %v511_v9 = vadd.f32 %v510_v1, %v442_v0 }
 0x1d6   : > { %v512_v5 = vpop.f32.mrf.mxu1 }
 0x1d7   : > { %v513_v6 = vadd.f32 %v512_v5, %v442_v0 }
 0x1d8   : > { %v514_v7 = vpop.f32.mrf.mxu1 }
 0x1d9   : > { %v515_v8 = vadd.f32 %v514_v7, %v447_v61  ;;  %758 = vtanh.f32 %v513_v6 }
 0x1da   : > { %v516_v10 = vpop.f32.mrf.mxu1 }
 0x1db   : > { %v517_v12 = vadd.f32 %v516_v10, %v447_v61  ;;  %760 = vtanh.f32 %v515_v8 }
 0x1dd   : > { %762 = vtanh.f32 %v517_v12 }
 0x1de   : > { %764 = vtanh.f32 %v511_v9 }
 0x1df   : > { %766 = vtanh.f32 %v503_v11 }
 0x1e0   : > { %768 = vtanh.f32 %v505_v13 }
 0x1e1   : > { %770 = vtanh.f32 %v501_v14 }
 0x1e2   : > { %v757_v15 = vpop.eup %756 }
 0x1e6   : > { %v759_v16 = vpop.eup %758 }
 0x1e8   : > { %v761_v17 = vpop.eup %760 }
 0x1ea   : > { %v763_v18 = vpop.eup %762 }
 0x1eb   : > { %v765_v19 = vpop.eup %764  ;;  %v531_v20 = vpack.c.bf16 %v763_v18, %v759_v16 }
 0x1ec   : > { %v767_v21 = vpop.eup %766  ;;  %v530_v22 = vpack.c.bf16 %v761_v17, %v765_v19 }
 0x1ed   : > { %v769_v23 = vpop.eup %768  ;;  %552 = vmatprep.subr.bf16.mxu0 %v531_v20  ;;  %v529_v24 = vpack.c.bf16 %v757_v15, %v767_v21 }
 0x1ee   : > { %553 = vmatpush1.bf16.msra.mxu0 %v530_v22  ;;  %v771_v25 = vpop.eup %770 }
 0x1ef   : > { %554 = vmatprep.subr.bf16.mxu0 %v529_v24  ;;  %v528_v26 = vpack.c.bf16 %v769_v23, %v771_v25 }
 0x1f2   : > { %555 = vmatpush1.bf16.msra.mxu0 %v528_v26 }
 0x1f5   : > { %702 = vmatmul.mubr.msk.bf16.vlgmr.msra.gmra.mxu0 %vm459_vm1, %v527_v27 }
 0x2b5   : > { %v574_v32 = vpop.f32.mrf.mxu0 }
 0x2b6   : > { %v575_v34 = vadd.f32 %v574_v32, %v535_v31 }
 0x2b7   : > { %v576_v35 = vpop.f32.mrf.mxu0 }
 0x2b8   : > { %v594_v37 = vadd.f32 %v592_v33, %v575_v34  ;;  %v577_v38 = vadd.f32 %v576_v35, %v535_v31 }
 0x2b9   : > { %v578_v39 = vpop.f32.mrf.mxu0 }
 0x2ba   : > { %v598_v40 = vrot.slane %v594_v37, 4  ;;  %v595_v41 = vadd.f32 %v593_v36, %v577_v38 }
 0x2bb   : > { %v579_v42 = vpop.f32.mrf.mxu0 }
 0x2bc   : > { %v603_v43 = vsel %vm602_vm2, %v575_v34, %v598_v40  ;;  %v599_v44 = vrot.slane %v595_v41, 4 }
 0x2bd   : > { %605 = vst [vmem:[%s300_s13] sm:$0xff] %v603_v43 }
 0x2be   : > { %v604_v45 = vsel %vm602_vm2, %v577_v38, %v599_v44 }
 0x2bf   : > { %606 = vst [vmem:[%s300_s13 + $0x8] sm:$0xff] %v604_v45 }
 0x2c0 PF: > { %p13_p9 = scmp.ge.s32.totalorder %s849_s25, 4   ;;  %s951_s21 = smov %s790_s22 }
 0x2c1   : > { %s952_s22 = smov %s858_s28  ;;  %s953_s23 = smov %s849_s25 }
 0x2c2   :  { %15 = sbr.rel (!%p13_p9) target bundleno = 2 (0x2), region = 105 }

</bundles_post_ra>
